<compile_context>
chip_gen: v7x
topology: tpu7x:2x2x1
jax: 0.10.0
libtpu: 0.0.40
codegen_flags: <defaults>
</compile_context>

<pallas_src>
import math

import jax
import jax.numpy as jnp
from jax.experimental import pallas as pl
from jax.experimental.pallas import tpu as pltpu


def _b1relu_kernel(x_ref, bias_ref, o_ref):
    # x_ref: (R, L) row tile; bias_ref: (1, L) broadcasts along the sublane axis.
    # Compute in the (promoted) output dtype to match torch's bias + x promotion.
    x = x_ref[...].astype(o_ref.dtype)
    o_ref[...] = jnp.maximum(x + bias_ref[...], 0.0).astype(o_ref.dtype)


def _round_up(a, m):
    return (a + m - 1) // m * m


def _run_rows(x2d, bias_row, out_dtype):
    """x2d: (rows, L) with L the lane width; bias_row: (1, L) in `out_dtype`.

    Tiles the row axis with large blocks; partial last block handled by Pallas
    boundary masking (no wrapper pad / slice)."""
    rows, L = x2d.shape
    x_isz = jnp.dtype(x2d.dtype).itemsize
    o_isz = jnp.dtype(out_dtype).itemsize

    # Dtype-aware sublane packing: 8 rows/vreg for f32, 16 for bf16, 32 for int8.
    sub = max(8, 32 // min(x_isz, o_isz))

    # ~4 MiB per input tile: double-buffered in + out (out may be 2x wider for
    # bf16 -> f32 promotion) stays ~24 MiB, inside the 48 MiB scoped budget and
    # v7x's 64 MiB/TC, while amortizing the ~0.35 us per-grid-step overhead.
    target_bytes = 4 * 1024 * 1024
    r_target = max(sub, (target_bytes // (L * x_isz)) // sub * sub)

    # Cap R at ~half the rows (sublane-aligned) so medium inputs still produce a
    # >= 2-step grid and both v7x TensorCores stream independent tiles.
    r_half = _round_up(pl.cdiv(rows, 2), sub)
    R = max(sub, min(r_target, r_half))

    grid = (pl.cdiv(rows, R),)  # boundary block masked by Pallas; no pad needed

    out = pl.pallas_call(
        _b1relu_kernel,
        out_shape=jax.ShapeDtypeStruct((rows, L), out_dtype),
        grid_spec=pltpu.PrefetchScalarGridSpec(
            num_scalar_prefetch=0,
            grid=grid,
            in_specs=[
                pl.BlockSpec((R, L), lambda i: (i, 0)),   # big row tile of x
                pl.BlockSpec((1, L), lambda i: (0, 0)),   # bias: constant block, resident
            ],
            out_specs=pl.BlockSpec((R, L), lambda i: (i, 0)),
        ),
        compiler_params=pltpu.CompilerParams(
            dimension_semantics=("parallel",),            # shard row tiles across TCs
            vmem_limit_bytes=48 * 1024 * 1024,            # v7x-safe, roomy on v5e/v6e
        ),
    )(x2d, bias_row)
    return out


def b1relu(x, bias):
    """x: (B, C, D) array; bias: (1, 1, D). Returns relu(bias + x) (promoted dtype)."""
    B, C, D = x.shape
    assert bias.shape == (1, 1, D)
    out_dtype = jnp.promote_types(x.dtype, bias.dtype)   # match torch promotion
    bias_flat = bias.astype(out_dtype).reshape(D)

    N = B * C * D
    L = (D * 128) // math.gcd(D, 128)                    # lcm(D, 128): multiple of 128 and D

    if N % L == 0:
        # Lane-dense path: fold the contiguous flat array to L lanes (free reshape,
        # no pad, no slice); bias tiles exactly L/D times into one resident row, so
        # every load / VPU op / store uses full 128-lane groups.
        x2d = x.reshape(N // L, L)
        bias_row = jnp.tile(bias_flat, L // D).reshape(1, L)
        out = _run_rows(x2d, bias_row, out_dtype)
        return out.reshape(B, C, D)
    else:
        # TODO(synk): when B*C*D isn't a multiple of lcm(D, 128) we keep the (B*C, D)
        # view (stores partially lane-masked) rather than paying extra pad/slice HBM
        # passes; still correct, just not lane-dense.
        x2d = x.reshape(B * C, D)
        out = _run_rows(x2d, bias_flat.reshape(1, D), out_dtype)
        return out.reshape(B, C, D)


if __name__ == "__main__":
    key = jax.random.PRNGKey(0)

    # Shapes consistent with the module: x (B, C, bias_shape), bias (1, 1, bias_shape).
    # Exercise the lane-dense fold (small D, D multiple of 128, lcm fold), the
    # masked-lane fallback, and mixed-dtype promotion.
    cases = [
        ((2, 4, 32), jnp.float32),    # 128 % D == 0  -> fold to (N/128, 128)
        ((2, 4, 128), jnp.float32),   # D % 128 == 0  -> rows = B*C
        ((2, 4, 48), jnp.float32),    # lcm fold: L = 384
        ((2, 3, 62), jnp.float32),    # N % lcm != 0  -> masked-lane fallback
        ((4, 4, 32), jnp.bfloat16),   # bf16 x + f32 bias -> promoted f32 output
    ]

    ok = True
    for (B, C, D), dt in cases:
        key, kx, kb = jax.random.split(key, 3)
        x = jax.random.normal(kx, (B, C, D), dtype=jnp.float32).astype(dt)
        # Parameter init in the module is zeros; use a random bias here so the
        # broadcast path is actually exercised (zeros would trivially pass).
        bias = jax.random.normal(kb, (1, 1, D), dtype=jnp.float32)

        out = jax.block_until_ready(b1relu(x, bias))
        ref = jnp.maximum(bias + x, 0.0)
        ok = (ok and out.shape == ref.shape and out.dtype == ref.dtype
              and bool(jnp.allclose(out, ref, atol=1e-6)))

    assert ok, "mismatch vs reference"
    print("KERNEL_OK")
</pallas_src>

<mosaic_0001>
module attributes {stable_mosaic.version = 11 : i64} {
  func.func @_b1relu_kernel(%arg0: i32, %arg1: memref<8x128xf32, #tpu.memory_space<vmem>>, %arg2: memref<1x128xf32, #tpu.memory_space<vmem>>, %arg3: memref<8x128xf32, #tpu.memory_space<vmem>>) attributes {dimension_semantics = [#tpu.dimension_semantics<parallel>], iteration_bounds = array<i64: 1>, scalar_prefetch = 0 : i64, scratch_operands = 0 : i64, tpu.core_type = #tpu.core_type<tc>, window_params = [{transform_indices = @transform_0, window_bounds = array<i64: 8, 128>}, {pipeline_mode = #tpu.pipeline_mode<synchronous>, transform_indices = @transform_1, window_bounds = array<i64: 1, 128>}, {transform_indices = @transform_2, window_bounds = array<i64: 8, 128>}]} {
    %c0 = arith.constant 0 : index
    %c0_0 = arith.constant 0 : index
    %0 = vector.load %arg1[%c0, %c0_0] : memref<8x128xf32, #tpu.memory_space<vmem>>, vector<8x128xf32>
    %c0_1 = arith.constant 0 : index
    %c0_2 = arith.constant 0 : index
    %1 = vector.load %arg2[%c0_1, %c0_2] : memref<1x128xf32, #tpu.memory_space<vmem>>, vector<1x128xf32>
    %2 = vector.broadcast %1 : vector<1x128xf32> to vector<8x128xf32>
    %3 = arith.addf %0, %2 : vector<8x128xf32>
    %cst = arith.constant 0.000000e+00 : f32
    %4 = vector.broadcast %cst : f32 to vector<8x128xf32>
    %5 = arith.maximumf %3, %4 : vector<8x128xf32>
    %c0_3 = arith.constant 0 : index
    %c0_4 = arith.constant 0 : index
    %6 = vector.load %arg3[%c0_3, %c0_4] : memref<8x128xf32, #tpu.memory_space<vmem>>, vector<8x128xf32>
    tpu.vector_store %arg3[%c0_3, %c0_4], %5 {strides = array<i32>} : memref<8x128xf32, #tpu.memory_space<vmem>>, vector<8x128xf32>,
    return
  }
  func.func @transform_0(%arg0: i32) -> (i32, i32) {
    %c0_i32 = arith.constant 0 : i32
    %c0_i32_0 = arith.constant 0 : i32
    return %arg0, %c0_i32 : i32, i32
  }
  func.func @transform_1(%arg0: i32) -> (i32, i32) {
    %c0_i32 = arith.constant 0 : i32
    %c0_i32_0 = arith.constant 0 : i32
    %c0_i32_1 = arith.constant 0 : i32
    return %c0_i32, %c0_i32_0 : i32, i32
  }
  func.func @transform_2(%arg0: i32) -> (i32, i32) {
    %c0_i32 = arith.constant 0 : i32
    %c0_i32_0 = arith.constant 0 : i32
    return %arg0, %c0_i32 : i32, i32
  }
}

</mosaic_0001>

<bundles_post_ra>
// kernel: tpu_custom_call.1
= control target key start
LH: loop header
LB: loop body
LE: loop exit
PB: predicated region body
PF: predicated region fallthrough
CT: control target
= control target key end

     0   :  { %7 = vsyncpa [#allocation3], 0  ;;  %s159_s0 = inlined_call_operand.hbm [shape: f32[2,128], index: 0, kind: input, shape index: {}]   ;;  %s160_s1 = inlined_call_operand.vmem [shape: f32[1,128], index: 1, kind: input, shape index: {}]   ;;  %s161_s2 = inlined_call_operand.hbm [shape: f32[2,128], index: 2, kind: output, shape index: {}]  }
   0x1   :  { %8 = vsyncpa [#allocation4], 0 }
   0x2   :  { %13 = vsyncadd [#allocation3], 96  ;;  %s107_s9 = smov [#allocation2]   ;;  %s59_s13 = scalar_lea.hbm %s159_s0, 32 }
   0x3   :  { %s14_s10 = sshll.u32 %s107_s9, 4  ;;  %p60_p0 = scmp.ne.s32.totalorder %s159_s0, %s59_s13  ;;  %s15_s10 = int_to_ptr.vmem [resolvable:$true] %s14_s10 }
   0x4   :  { %p63_p1 = scmp.lt.u32.totalorder %s59_s13, %s159_s0 }
   0x6   :  { %p65_p2 = pnand %p63_p1, %p60_p0 }
   0x8   :  { %68 = shalt.err (!%p65_p2)
}
   0x9   :  { %s69_s18 = scalar_lea.vmem %s15_s10, 32  ;;  %s73_s19 = scalar_lea.vmem %s15_s10, 128 }
   0xa   :  { %p70_p3 = scmp.ne.s32.totalorder %s15_s10, %s69_s18  ;;  %p74_p4 = scmp.lt.s32.totalorder %s15_s10, %s15_s10 }
   0xb   :  { %p75_p5 = scmp.lt.s32.totalorder %s73_s19, %s69_s18 }
   0xd   :  { %p76_p6 = por %p75_p5, %p74_p4 }
   0xf   :  { %p77_p7 = pnand %p76_p6, %p70_p3 }
  0x11   :  { %80 = shalt.err (!%p77_p7)
}
  0x12   :  { %s108_s20 = smov 32   ;;  %s109_s21 = smov 2  }
  0x13   :  { %20 = dma.hbm_to_vmem [thread:$0]  %s159_s0, 32, %s15_s10, [#allocation3], %s108_s20, %s108_s20, %s109_s21  }
  0x14   :  { %103 = dma.done.wait [#allocation3], 128  }
  0x15   :  { %104 = vsyncadd [#allocation3], 4294967168  ;;  %v26_v0 = vld [vmem:[#allocation2] sm:$0xff] }
  0x16   :  { %v54_v1 = vld [vmem:[%s160_s1] ss:$0 sm:$0xff] }
  0x17   :  { %v34_v2 = vadd.f32 %v54_v1, %v26_v0 }
  0x19   :  { %v35_v3 = vmax.f32 %v34_v2, 0.0 }
  0x1b   :  { %36 = vst [vmem:[#allocation5] sm:$0xff] %v35_v3 }
  0x1c   :  { %41 = vsyncadd [#allocation4], 96  ;;  %s110_s26 = smov [#allocation5]  }
  0x1d   :  { %s42_s27 = sshll.u32 %s110_s26, 4  ;;  %s43_s27 = int_to_ptr.vmem [resolvable:$true] %s42_s27 }
  0x1e   :  { %s81_s28 = scalar_lea.vmem %s43_s27, 32  ;;  %s85_s29 = scalar_lea.vmem %s43_s27, 128 }
  0x1f   :  { %p82_p8 = scmp.ne.s32.totalorder %s43_s27, %s81_s28  ;;  %p86_p9 = scmp.lt.s32.totalorder %s43_s27, %s43_s27 }
  0x20   :  { %p87_p10 = scmp.lt.s32.totalorder %s85_s29, %s81_s28 }
  0x22   :  { %p88_p11 = por %p87_p10, %p86_p9 }
  0x24   :  { %p89_p12 = pnand %p88_p11, %p82_p8 }
  0x26   :  { %92 = shalt.err (!%p89_p12)
}
  0x27   :  { %s93_s3 = scalar_lea.hbm %s161_s2, 32 }
  0x28   :  { %p94_p13 = scmp.ne.s32.totalorder %s161_s2, %s93_s3  ;;  %p97_p0 = scmp.lt.u32.totalorder %s93_s3, %s161_s2 }
  0x2a   :  { %p99_p1 = pnand %p97_p0, %p94_p13 }
  0x2c   :  { %102 = shalt.err (!%p99_p1)
}
  0x2d   :  { %48 = dma.vmem_to_hbm [thread:$0]  %s43_s27, 32, %s161_s2, [#allocation4], %s108_s20, %s108_s20, %s109_s21  }
  0x2e   :  { %105 = dma.done.wait [#allocation4], 128  }
  0x2f   :  { %106 = vsyncadd [#allocation4], 4294967168 }
  0x30   :  { %52 = vsyncpa [#allocation3], 1 }
  0x31   :  { %53 = vsyncpa [#allocation4], 1 }

</bundles_post_ra>
